<compile_context>
chip_gen: v7x
topology: tpu7x:2x2x1
jax: 0.10.0
libtpu: 0.0.40
codegen_flags: <defaults>
</compile_context>

<pallas_src>
import functools

import jax
import jax.numpy as jnp
import numpy as np
from jax import lax
from jax.experimental import pallas as pl
from jax.experimental.pallas import tpu as pltpu


def _prompt_kernel(bias_ref, skel_ref, out_ref, *, n_ctx_pre, l_cls, n_ctx_post):
    """One (TB, CN, T, D) output tile:  out = skeleton + bias * ctx_token_mask."""
    cn, t, d = skel_ref.shape

    # Token mask: 1.0 on ctx_pre / ctx_post slots, 0.0 on prefix / cls / suffix.
    tok = lax.broadcasted_iota(jnp.int32, (t, 1), 0)                    # (T, 1)
    pre_lo, pre_hi = 1, 1 + n_ctx_pre
    post_lo, post_hi = pre_hi + l_cls, pre_hi + l_cls + n_ctx_post
    is_ctx = ((tok >= pre_lo) & (tok < pre_hi)) | ((tok >= post_lo) & (tok < post_hi))
    mask = is_ctx.astype(jnp.float32)                                   # (T, 1)

    # Class-invariant shifted-ctx slab; math stays in f32, cast only at the store.
    biased = bias_ref[...] * mask[None, :, :]                           # (TB, T, D) f32
    skel = skel_ref[...].astype(jnp.float32)                            # (CN, T, D) f32

    # Single fused broadcast-add + dense lane/sublane-aligned store (no broadcast_to
    # temps, no masked partial stores).
    out_ref[...] = (skel[None, :, :, :] + biased[:, None, :, :]).astype(out_ref.dtype)


def _pick_tile(n, max_tile):
    """Largest divisor of n that is <= max_tile (n itself if n <= max_tile)."""
    if n <= max_tile:
        return n
    for t in range(max_tile, 0, -1):
        if n % t == 0:
            return t
    return 1


def prompt_learner_forward(im_features, w1, b1, w2, b2,
                           ctx_pre, ctx_post,
                           token_prefix, token_cls, token_suffix,
                           *, out_dtype=jnp.bfloat16,
                           batch_tile=None, cls_tile=None,
                           vmem_limit_bytes=48 * 1024 * 1024):
    im_features = im_features.reshape(-1, im_features.shape[-1])
    B, vis_dim = im_features.shape
    n_ctx_pre, ctx_dim = ctx_pre.shape
    n_ctx_post = ctx_post.shape[0]
    n_cls = token_prefix.shape[0]
    l_cls = token_cls.shape[1]
    T = 1 + n_ctx_pre + l_cls + n_ctx_post + 1

    # --- meta-net MLP hoisted to XLA (tiny: vis_dim*hidden + hidden*ctx_dim FLOPs).
    # Keeping it outside the kernel removes the scratch/grid-order coupling and lets
    # both grid axes be "parallel".
    # TODO(synk): PyTorch runs meta_net in fp16; f32 here (intentional, not bit-matching).
    x = im_features.astype(jnp.float32)
    h = jnp.maximum(jnp.dot(x, w1.astype(jnp.float32)) + b1.astype(jnp.float32), 0.0)
    bias = jnp.dot(h, w2.astype(jnp.float32)) + b2.astype(jnp.float32)   # (B, ctx_dim)
    bias = bias.reshape(B, 1, ctx_dim)                                   # leading TB dim untiled

    # Batch-invariant prompt skeleton (ctx slots hold the *unshifted* learned ctx
    # vectors; the kernel adds the per-image bias onto exactly those slots).
    # Stored in out_dtype (bf16 by default) to halve its HBM read traffic.
    skeleton = jnp.concatenate(
        [token_prefix,
         jnp.broadcast_to(ctx_pre[None], (n_cls, n_ctx_pre, ctx_dim)),
         token_cls,
         jnp.broadcast_to(ctx_post[None], (n_cls, n_ctx_post, ctx_dim)),
         token_suffix], axis=1).astype(out_dtype)                        # (n_cls, T, D)

    out_bytes = jnp.dtype(out_dtype).itemsize
    skel_bytes = jnp.dtype(out_dtype).itemsize

    # --- tile selection --------------------------------------------------------
    # Small batch tile, grow the class tile; budget 60% of the scoped VMEM limit and
    # account for: 2x output block, 2x skeleton block, the in-kernel (TB,T,D) f32
    # temp, the bias blocks, and the T -> multiple-of-8 sublane padding.
    T_pad = -(-T // 8) * 8
    if batch_tile is None:
        batch_tile = _pick_tile(B, 8)
    TB = batch_tile
    if cls_tile is None:
        budget = int(0.6 * vmem_limit_bytes)
        fixed = (TB * T_pad * ctx_dim * 4            # biased f32 temp
                 + 2 * TB * 8 * ctx_dim * 4          # double-buffered bias blocks (padded)
                 + (1 << 20))                        # slack for Mosaic internals
        per_cn = T_pad * ctx_dim * (2 * TB * out_bytes + 2 * skel_bytes)
        cap = max(1, (budget - fixed) // per_cn)
        cls_tile = _pick_tile(n_cls, cap)
    CN = cls_tile

    # v7x megacore: ensure the parallel grid has >= 2 steps when the problem allows,
    # so both TensorCores get work.
    if (B // TB) * (n_cls // CN) < 2 and n_cls >= 2:
        CN = _pick_tile(n_cls, max(1, n_cls // 2))

    assert B % TB == 0 and n_cls % CN == 0, (B, TB, n_cls, CN)

    kernel = functools.partial(_prompt_kernel, n_ctx_pre=n_ctx_pre,
                               l_cls=l_cls, n_ctx_post=n_ctx_post)

    # grid = (class tiles [slow], batch tiles [fast]); the skeleton block index only
    # depends on the slow axis, so its HBM read happens once per class tile.
    return pl.pallas_call(
        kernel,
        out_shape=jax.ShapeDtypeStruct((B, n_cls, T, ctx_dim), out_dtype),
        grid_spec=pltpu.PrefetchScalarGridSpec(
            num_scalar_prefetch=0,
            grid=(n_cls // CN, B // TB),
            in_specs=[
                pl.BlockSpec((TB, 1, ctx_dim), lambda c, b: (b, 0, 0)),    # bias
                pl.BlockSpec((CN, T, ctx_dim), lambda c, b: (c, 0, 0)),    # skeleton
            ],
            out_specs=pl.BlockSpec((TB, CN, T, ctx_dim),
                                   lambda c, b: (b, c, 0, 0)),
        ),
        compiler_params=pltpu.CompilerParams(
            dimension_semantics=("parallel", "parallel"),
            vmem_limit_bytes=vmem_limit_bytes),
    )(bias, skeleton)


def reference_forward(im_features, w1, b1, w2, b2,
                      ctx_pre, ctx_post,
                      token_prefix, token_cls, token_suffix):
    """Pure-JAX (f32) reference mirroring the PyTorch forward."""
    x = im_features.reshape(-1, im_features.shape[-1])
    h = jnp.maximum(x @ w1 + b1, 0.0)
    bias = (h @ w2 + b2)[:, None, :]                                    # (B, 1, D)
    shifted_pre = ctx_pre[None] + bias                                  # (B, n_pre, D)
    shifted_post = ctx_post[None] + bias                                # (B, n_post, D)
    n_cls = token_prefix.shape[0]

    def per_image(sp, spo):
        return jnp.concatenate(
            [token_prefix,
             jnp.broadcast_to(sp[None], (n_cls,) + sp.shape),
             token_cls,
             jnp.broadcast_to(spo[None], (n_cls,) + spo.shape),
             token_suffix], axis=1)

    return jax.vmap(per_image)(shifted_pre, shifted_post)


if __name__ == "__main__":
    def make_inputs(key, B, vis_dim, ctx_dim, n_cls, n_pre, n_post, l_cls):
        hidden = max(vis_dim // 16, 8)
        ks = jax.random.split(key, 10)
        im = jax.random.normal(ks[0], (B, vis_dim), jnp.float32)
        w1 = jax.random.normal(ks[1], (vis_dim, hidden), jnp.float32) * 0.02
        b1 = jax.random.normal(ks[2], (1, hidden), jnp.float32) * 0.02
        w2 = jax.random.normal(ks[3], (hidden, ctx_dim), jnp.float32) * 0.02
        b2 = jax.random.normal(ks[4], (1, ctx_dim), jnp.float32) * 0.02
        ctx_pre = jax.random.normal(ks[5], (n_pre, ctx_dim), jnp.float32) * 0.02
        ctx_post = jax.random.normal(ks[6], (n_post, ctx_dim), jnp.float32) * 0.02
        # Frozen CLIP token-embedding buffers (synthetic stand-ins).
        # TODO(synk): real module derives these from clip_model.token_embedding(tokenized prompts).
        tp = jax.random.normal(ks[7], (n_cls, 1, ctx_dim), jnp.float32) * 0.02
        tc = jax.random.normal(ks[8], (n_cls, l_cls, ctx_dim), jnp.float32) * 0.02
        ts = jax.random.normal(ks[9], (n_cls, 1, ctx_dim), jnp.float32) * 0.02
        return (im, w1, b1, w2, b2, ctx_pre, ctx_post, tp, tc, ts)

    key = jax.random.PRNGKey(0)
    k1, k2 = jax.random.split(key)

    # Case 1: toy shapes, auto-tiling path, f32 output -> exact match vs reference.
    args1 = make_inputs(k1, B=2, vis_dim=128, ctx_dim=128,
                        n_cls=3, n_pre=4, n_post=4, l_cls=2)
    out1 = jax.block_until_ready(
        prompt_learner_forward(*args1, out_dtype=jnp.float32))
    ref1 = jax.block_until_ready(reference_forward(*args1))
    np.testing.assert_allclose(np.asarray(out1), np.asarray(ref1), rtol=1e-5, atol=1e-5)
    assert out1.shape == (2, 3, 1 + 4 + 2 + 4 + 1, 128)

    # Case 2: multi-tile grid (2 class tiles x 2 batch tiles), default bf16 output.
    args2 = make_inputs(k2, B=16, vis_dim=128, ctx_dim=128,
                        n_cls=6, n_pre=4, n_post=4, l_cls=2)
    out2 = jax.block_until_ready(
        prompt_learner_forward(*args2, batch_tile=8, cls_tile=3))
    ref2 = jax.block_until_ready(reference_forward(*args2))
    np.testing.assert_allclose(np.asarray(out2, dtype=np.float32),
                               np.asarray(ref2), rtol=2e-2, atol=2e-3)
    assert out2.dtype == jnp.bfloat16
    assert out2.shape == (16, 6, 1 + 4 + 2 + 4 + 1, 128)

    print("KERNEL_OK")
</pallas_src>

<mosaic_0001>
module attributes {stable_mosaic.version = 11 : i64} {
  func.func @_prompt_kernel(%arg0: i32, %arg1: i32, %arg2: memref<2x1x128xf32, #tpu.memory_space<vmem>>, %arg3: memref<1x12x128xf32, #tpu.memory_space<vmem>>, %arg4: memref<2x1x12x128xf32, #tpu.memory_space<vmem>>) attributes {dimension_semantics = [#tpu.dimension_semantics<parallel>, #tpu.dimension_semantics<parallel>], iteration_bounds = array<i64: 3, 1>, scalar_prefetch = 0 : i64, scratch_operands = 0 : i64, tpu.core_type = #tpu.core_type<tc>, window_params = [{transform_indices = @transform_0, window_bounds = array<i64: 2, 1, 128>}, {transform_indices = @transform_1, window_bounds = array<i64: 1, 12, 128>}, {transform_indices = @transform_2, window_bounds = array<i64: 2, 1, 12, 128>}]} {
    %0 = tpu.iota {dimensions = array<i32: 0>} : vector<12x1xi32>
    %c1_i32 = arith.constant 1 : i32
    %1 = vector.broadcast %c1_i32 : i32 to vector<12x1xi32>
    %2 = arith.cmpi sge, %0, %1 : vector<12x1xi32>
    %c5_i32 = arith.constant 5 : i32
    %3 = vector.broadcast %c5_i32 : i32 to vector<12x1xi32>
    %4 = arith.cmpi slt, %0, %3 : vector<12x1xi32>
    %5 = arith.andi %2, %4 : vector<12x1xi1>
    %c7_i32 = arith.constant 7 : i32
    %6 = vector.broadcast %c7_i32 : i32 to vector<12x1xi32>
    %7 = arith.cmpi sge, %0, %6 : vector<12x1xi32>
    %c11_i32 = arith.constant 11 : i32
    %8 = vector.broadcast %c11_i32 : i32 to vector<12x1xi32>
    %9 = arith.cmpi slt, %0, %8 : vector<12x1xi32>
    %10 = arith.andi %7, %9 : vector<12x1xi1>
    %11 = arith.ori %5, %10 : vector<12x1xi1>
    %12 = arith.extui %11 : vector<12x1xi1> to vector<12x1xi32>
    %13 = arith.sitofp %12 : vector<12x1xi32> to vector<12x1xf32>
    %c0 = arith.constant 0 : index
    %c0_0 = arith.constant 0 : index
    %c0_1 = arith.constant 0 : index
    %14 = vector.load %arg2[%c0, %c0_0, %c0_1] : memref<2x1x128xf32, #tpu.memory_space<vmem>>, vector<2x1x128xf32>
    %15 = vector.shape_cast %13 : vector<12x1xf32> to vector<1x12x1xf32>
    %16 = vector.broadcast %14 : vector<2x1x128xf32> to vector<2x12x128xf32>
    %17 = vector.broadcast %15 : vector<1x12x1xf32> to vector<2x12x128xf32>
    %18 = arith.mulf %16, %17 : vector<2x12x128xf32>
    %c0_2 = arith.constant 0 : index
    %c0_3 = arith.constant 0 : index
    %c0_4 = arith.constant 0 : index
    %19 = vector.load %arg3[%c0_2, %c0_3, %c0_4] : memref<1x12x128xf32, #tpu.memory_space<vmem>>, vector<1x12x128xf32>
    %20 = vector.shape_cast %19 : vector<1x12x128xf32> to vector<1x1x12x128xf32>
    %21 = vector.shape_cast %18 : vector<2x12x128xf32> to vector<2x1x12x128xf32>
    %22 = vector.broadcast %20 : vector<1x1x12x128xf32> to vector<2x1x12x128xf32>
    %23 = arith.addf %22, %21 : vector<2x1x12x128xf32>
    %c0_5 = arith.constant 0 : index
    %c0_6 = arith.constant 0 : index
    %c0_7 = arith.constant 0 : index
    %c0_8 = arith.constant 0 : index
    %24 = vector.load %arg4[%c0_5, %c0_6, %c0_7, %c0_8] : memref<2x1x12x128xf32, #tpu.memory_space<vmem>>, vector<2x1x12x128xf32>
    tpu.vector_store %arg4[%c0_5, %c0_6, %c0_7, %c0_8], %23 {strides = array<i32>} : memref<2x1x12x128xf32, #tpu.memory_space<vmem>>, vector<2x1x12x128xf32>,
    return
  }
  func.func @transform_0(%arg0: i32, %arg1: i32) -> (i32, i32, i32) {
    %c0_i32 = arith.constant 0 : i32
    %c0_i32_0 = arith.constant 0 : i32
    %c0_i32_1 = arith.constant 0 : i32
    return %arg1, %c0_i32, %c0_i32_0 : i32, i32, i32
  }
  func.func @transform_1(%arg0: i32, %arg1: i32) -> (i32, i32, i32) {
    %c0_i32 = arith.constant 0 : i32
    %c0_i32_0 = arith.constant 0 : i32
    %c0_i32_1 = arith.constant 0 : i32
    return %arg0, %c0_i32, %c0_i32_0 : i32, i32, i32
  }
  func.func @transform_2(%arg0: i32, %arg1: i32) -> (i32, i32, i32, i32) {
    %c0_i32 = arith.constant 0 : i32
    %c0_i32_0 = arith.constant 0 : i32
    %c0_i32_1 = arith.constant 0 : i32
    return %arg1, %arg0, %c0_i32, %c0_i32_0 : i32, i32, i32, i32
  }
}

</mosaic_0001>

<bundles_post_ra>
// kernel: tpu_custom_call.1
= control target key start
LH: loop header
LB: loop body
LE: loop exit
PB: predicated region body
PF: predicated region fallthrough
CT: control target
= control target key end

     0   :  { %7 = vsyncpa [#allocation3], 0  ;;  %s796_s0 = inlined_call_operand.hbm [shape: f32[2,1,128], index: 0, kind: input, shape index: {}]   ;;  %s797_s1 = inlined_call_operand.hbm [shape: f32[3,12,128], index: 1, kind: input, shape index: {}]   ;;  %s798_s2 = inlined_call_operand.vmem [shape: f32[2,3,12,128], index: 2, kind: output, shape index: {}]  }
   0x1   :  { %8 = vsyncpa [#allocation5], 0 }
   0x2   :  { %10 = vsyncpa [#allocation5 + $0x1], 0  ;;  %s620_s9 = smov 0   ;;  %s622_s10 = smov 0  }
   0x3   :  { %s624_s11 = smov 0   ;;  %s626_s12 = smov 0  }
   0x4   :  { %s628_s13 = smov 0   ;;  %s630_s14 = smov 0  }
   0x5 LB: > { %s390_s15 = sadd.s32 4294967295, %s596_s14   ;;  %p74_p0 = scmp.ne.s32.totalorder %s580_s10, %s576_s9  ;;  %s596_s14 = sphi %s630_s14, %s16_s14   ;;  %s592_s13 = sphi %s628_s13, %s818_s13   ;;  %s588_s12 = sphi %s626_s12, %s817_s12   ;;  %s584_s11 = sphi %s624_s11, %s816_s11   ;;  %s580_s10 = sphi %s622_s10, %s815_s10   ;;  %s576_s9 = sphi %s620_s9, %s814_s9  }
   0x6   : > { %p650_p1 = scmp.eq.s32.totalorder %s390_s15, 0  ;;  %p654_p2 = scmp.eq.s32.totalorder %s390_s15, 2 }
   0x7   : > { %p392_p3 = scmp.ge.s32.totalorder %s596_s14, 1  ;;  %p113_p4 = scmp.lt.s32.totalorder %s596_s14, 4 }
   0x8   : > { %s803_s16 = scalar_select %p650_p1, 1, 0 }
   0x9   : > { %s804_s17 = scalar_select %p654_p2, 1, 0 }
   0xa   : > { %p662_p5 = por %p650_p1, %p74_p0  ;;  %p666_p6 = pnand %p392_p3, %p113_p4 }
   0xb   : > { %s598_s20 = smov [#allocation2]   ;;  %s484_s25 = scalar_lea.hbm %s796_s0, 32 }
   0xc   : > { %s805_s18 = scalar_select %p662_p5, 1, 0 }
   0xd   : > { %s806_s19 = scalar_select %p666_p6, 1, 0 }
   0xe   : > { %s128_s21 = sshll.u32 %s598_s20, 4  ;;  %p419_p7 = pneg %p666_p6  ;;  %s129_s21 = int_to_ptr.vmem [resolvable:$true] %s128_s21 }
   0xf   : > { %p485_p9 = scmp.ne.s32.totalorder %s796_s0, %s484_s25  ;;  %p491_p13 = scmp.lt.u32.totalorder %s484_s25, %s796_s0 }
  0x10   : > { %p674_p8 = pnand %p419_p7, %p650_p1 }
  0x12   : > { %p486_p10 = pneg %p674_p8 }
  0x14   : > { %p487_p11 = pnand %p486_p10, %p485_p9 }
  0x16   : > { %p488_p12 = pneg %p487_p11 }
  0x18   : > { %p493_p0 = pnand %p491_p13, %p488_p12 }
  0x1a   : > { %496 = shalt.err (!%p493_p0)
}
  0x1b   : > { %s497_s30 = scalar_lea.vmem %s129_s21, 32  ;;  %p505_p5 = scmp.lt.s32.totalorder %s129_s21, %s129_s21 }
  0x1c   : > { %p498_p3 = scmp.ne.s32.totalorder %s129_s21, %s497_s30  ;;  %p506_p1 = scmp.lt.s32.totalorder %s497_s30, %s497_s30 }
  0x1e   : > { %p500_p4 = pnand %p498_p3, %p486_p10  ;;  %p507_p6 = por %p506_p1, %p505_p5 }
  0x20   : > { %p501_p7 = pneg %p500_p4 }
  0x22   : > { %p508_p2 = pnand %p507_p6, %p501_p7 }
  0x24   : > { %511 = shalt.err (!%p508_p2)
}
  0x25   : > { %s599_s3 = smov 16   ;;  %s600_s4 = smov 1  }
  0x26   : > { %422 = dma.hbm_to_vmem [thread:$0]  (!%p674_p8), %s796_s0, 32, %s129_s21, [#allocation3], %s599_s3, %s599_s3, %s600_s4  }
  0x27   : > { %s28_s7 = sadd.s32 1, %s592_s13  ;;  %s61_s8 = sadd.s32 1, %s584_s11 }
  0x28   : > { %p30_p1 = scmp.ge.s32.totalorder %s28_s7, 3  ;;  %p68_p2 = scmp.ne.s32.totalorder %s584_s11, %s580_s10 }
  0x29   : > { %p69_p5 = scmp.eq.s32.totalorder %s596_s14, 0  ;;  %p428_p6 = scmp.lt.s32.totalorder %s596_s14, 3 }
  0x2a   : > { %s820_s7 = smov (%p30_p1, %s28_s7), 0  ;;  %p808_p10 = scmp.ne.s32.totalorder %s804_s17, 0 }
  0x2b   : > { %p70_p9 = por %p69_p5, %p68_p2  ;;  %s58_s15 = ssub.s32 %s592_s13, %s820_s7 }
  0x2c   : > { %p704_p11 = por %p808_p10, %p68_p2  ;;  %s142_s20 = sand.u32 1, %s584_s11  }
  0x2d   : > { %p59_p12 = scmp.eq.s32.totalorder %s58_s15, 0  ;;  %s395_s21 = sshll.u32 %s142_s20, 4 }
  0x2e   : > { %s411_s22 = sshll.u32 %s592_s13, 8  ;;  %s146_s17 = scalar_lea.vmem [#allocation4], %s395_s21 }
  0x2f   : > { %s713_s23 = scalar_select %p59_p12, %s584_s11, %s61_s8  }
  0x30   : > { %s718_s26 = scalar_lea.hbm %s797_s1, %s411_s22  ;;  %s153_s27 = sshll.u32 %s146_s17, 4  ;;  %s726_s27 = int_to_ptr.vmem [resolvable:$true] %s153_s27 }
  0x31   : > { %p722_p8 = pnand %p428_p6, %p70_p9  ;;  %s728_s29 = scalar_lea.sflag [#allocation5], %s142_s20 }
  0x32   : > { %s512_s30 = scalar_lea.hbm %s718_s26, 256  ;;  %s517_s5 = scalar_lea.hbm %s797_s1, 768 }
  0x33   : > { %p513_p13 = scmp.ne.s32.totalorder %s718_s26, %s512_s30  ;;  %p514_p0 = pneg %p722_p8 }
  0x34   : > { %p518_p7 = scmp.lt.u32.totalorder %s718_s26, %s797_s1  ;;  %p519_p1 = scmp.lt.u32.totalorder %s517_s5, %s512_s30 }
  0x35   : > { %p515_p3 = pnand %p514_p0, %p513_p13  ;;  %p521_p5 = scmp.lt.u32.totalorder %s512_s30, %s718_s26 }
  0x36   : > { %p520_p2 = por %p519_p1, %p518_p7 }
  0x37   : > { %p516_p4 = pneg %p515_p3 }
  0x38   : > { %p522_p6 = por %p521_p5, %p520_p2 }
  0x3a   : > { %p523_p9 = pnand %p522_p6, %p516_p4 }
  0x3c   : > { %526 = shalt.err (!%p523_p9)
}
  0x3d   : > { %s527_s15 = scalar_lea.vmem %s726_s27, 256  ;;  %s601_s20 = smov [#allocation4]  }
  0x3e   : > { %p528_p10 = scmp.ne.s32.totalorder %s726_s27, %s527_s15  ;;  %s532_s21 = sshll.u32 %s601_s20, 4  ;;  %s533_s21 = int_to_ptr.vmem [resolvable:$false] %s532_s21 }
  0x3f   : > { %s534_s22 = scalar_lea.vmem %s533_s21, 512  ;;  %p535_p3 = scmp.lt.s32.totalorder %s726_s27, %s533_s21 }
  0x40   : > { %p530_p12 = pnand %p528_p10, %p514_p0  ;;  %p536_p7 = scmp.lt.s32.totalorder %s534_s22, %s527_s15 }
  0x42   : > { %p531_p13 = pneg %p530_p12  ;;  %p537_p1 = por %p536_p7, %p535_p3 }
  0x44   : > { %p538_p2 = pnand %p537_p1, %p531_p13 }
  0x46   : > { %541 = shalt.err (!%p538_p2)
}
  0x47   : > { %s602_s24 = smov 128   ;;  %s603_s25 = smov 8  }
  0x48   : > { %426 = dma.hbm_to_vmem [thread:$0]  (!%p722_p8), %s718_s26, 256, %s726_s27, %s728_s29, %s602_s24, %s602_s24, %s603_s25  }
  0x49   : > { %p811_p0 = scmp.ne.s32.totalorder %s806_s19, 0 }
  0x4a   : > { %p812_p4 = scmp.ne.s32.totalorder (!%p811_p0), %s803_s16, 0 }
  0x4b   : > { %165 = sbr.rel (%p811_p0) target bundleno = 109 (0x6d), region = 28 }
  0x52   : > { %567 = dma.done.wait (%p812_p4), [#allocation3], 32  }
  0x53   : > { %569 = vsyncadd (%p812_p4), [#allocation3], 4294967264  ;;  %s763_s17 = sand.u32 1, %s580_s10   ;;  %p813_p5 = scmp.ne.s32.totalorder %s805_s18, 0 }
  0x54   : > { %s400_s30 = sshll.u32 %s763_s17, 4  ;;  %s172_s3 = scalar_lea.sflag [#allocation5], %s763_s17 }
  0x55   : > { %s175_s4 = scalar_lea.vmem [#allocation4], %s400_s30 }
  0x56   : > { %571 = dma.done.wait (%p813_p5), %s172_s3, 256  }
  0x57   : > { %573 = vsyncadd (%p813_p5), %s172_s3, 4294967040  ;;  %v197_v0 = vlaneseq  ;;  %s401_s16 = sshll.u32 %s763_s17, 5  ;;  %v604_v3 = vmov 0.0   ;;  %v404_v5 = vld [vmem:[#allocation2] ss:$0 sm:$0xff]  ;;  %v236_v6 = vld [vmem:[%s175_s4] sm:$0xff] }
  0x58   : > { %v237_v10 = vld [vmem:[%s175_s4 + $0x8] sm:$0xf]  ;;  %v405_v11 = vld [vmem:[#allocation2 + $0x1] ss:$0 sm:$0xff]  ;;  %s194_s18 = scalar_lea.vmem [#allocation6], %s401_s16  ;;  %s412_s19 = sshll.u32 (%p704_p11), %s588_s12, 4 }
  0x59   : > { %v198_v1 = vshrl.u32 %v197_v0, 7  ;;  %s258_s28 = scalar_lea.vmem (%p704_p11), %s798_s2, %s412_s19 }
  0x5b   : > { %vm200_vm0 = vcmp.ge.s32.totalorder %v198_v1, 1  ;;  %vm202_vm1 = vcmp.lt.s32.totalorder %v198_v1, 5  ;;  %vm206_vm2 = vcmp.ge.s32.totalorder %v198_v1, 7  ;;  %v199_v2 = vadd.s32 8, %v198_v1 }
  0x5c   : > { %vm204_vm3 = vmand %vm200_vm0, %vm202_vm1 }
  0x5d   : > { %vm212_vm4 = vmor %vm204_vm3, %vm206_vm2  ;;  %vm209_vm5 = vcmp.lt.s32.totalorder %v199_v2, 11 }
  0x5e   : > { %v402_v4 = vsel %vm212_vm4, 1.0, %v604_v3  ;;  %v403_v7 = vsel %vm209_vm5, 1.0, %v604_v3  ;;  %252 = sbr.rel (!%p704_p11) target bundleno = 109 (0x6d), region = 40 }
  0x5f   : > { %v232_v8 = vmul.f32 %v404_v5, %v402_v4  ;;  %v233_v9 = vmul.f32 %v404_v5, %v403_v7  ;;  %v234_v12 = vmul.f32 %v405_v11, %v402_v4  ;;  %v235_v13 = vmul.f32 %v405_v11, %v403_v7 }
  0x61   : > { %v238_v14 = vadd.f32 %v236_v6, %v232_v8  ;;  %v239_v15 = vadd.f32 %v237_v10, %v233_v9  ;;  %v240_v16 = vadd.f32 %v236_v6, %v234_v12  ;;  %v241_v17 = vadd.f32 %v237_v10, %v235_v13 }
  0x63   : > { %242 = vst [vmem:[%s194_s18] sm:$0xff] %v238_v14  ;;  %243 = vst [vmem:[%s194_s18 + $0x8] sm:$0xf] %v239_v15 }
  0x64   : > { %244 = vst [vmem:[%s194_s18 + $0x10] sm:$0xff] %v240_v16  ;;  %245 = vst [vmem:[%s194_s18 + $0x18] sm:$0xf] %v241_v17 }
  0x6a   : > { %v292_v18 = vld [vmem:[%s194_s18] sm:$0xff]  ;;  %v294_v19 = vld [vmem:[%s194_s18 + $0x8] sm:$0xff] }
  0x6b   : > { %v296_v20 = vld [vmem:[%s194_s18 + $0x10] sm:$0xff]  ;;  %v298_v21 = vld [vmem:[%s194_s18 + $0x18] sm:$0xff]  ;;  %293 = vst [vmem:[%s258_s28] sm:$0xff] %v292_v18  ;;  %295 = vst [vmem:[%s258_s28 + $0x8] sm:$0xff] %v294_v19 }
  0x6c   : > { %297 = vst [vmem:[%s258_s28 + $0x30] sm:$0xff] %v296_v20  ;;  %299 = vst [vmem:[%s258_s28 + $0x38] sm:$0xff] %v298_v21 }
  0x6d PF: > { %s16_s14 = sadd.s32 1, %s596_s14   ;;  %s814_s9 = smov %s580_s10 }
  0x6e   : > { %p13_p8 = scmp.ge.s32.totalorder %s16_s14, 5   ;;  %s815_s10 = smov %s584_s11 }
  0x6f   : > { %s816_s11 = smov %s713_s23  ;;  %s817_s12 = smov %s592_s13 }
  0x70   : > { %s818_s13 = smov %s820_s7  ;;  %15 = sbr.rel (!%p13_p8) target bundleno = 5 (0x5), region = 112 }
  0x77   :  { %315 = vsyncpa [#allocation3], 1 }
  0x78   :  { %317 = vsyncpa [#allocation3 + $0x1], 1 }
  0x79   :  { %318 = vsyncpa [#allocation5], 1 }
  0x7a   :  { %320 = vsyncpa [#allocation5 + $0x1], 1 }

</bundles_post_ra>
